<compile_context>
chip_gen: v7x
topology: tpu7x:2x2x1
jax: 0.10.0
libtpu: 0.0.40
codegen_flags: <defaults>
</compile_context>

<pallas_src>
import functools

import jax
import jax.numpy as jnp
from jax import lax
from jax.experimental import pallas as pl
from jax.experimental.pallas import tpu as pltpu


def _round_up(x, m):
    return ((x + m - 1) // m) * m


# ---------------------------------------------------------------------------
# Fast path: position_ids is None  ->  contiguous copy of pe_table[:seq].
# ---------------------------------------------------------------------------
def _copy_kernel(src_ref, out_ref):
    # src block: (TQ, emb_dim); out block: (1, TQ, emb_dim) — dense copy.
    out_ref[...] = src_ref[...][None, :, :]


def _contiguous_positional_encoding(pe_table, seq):
    _, emb_dim = pe_table.shape
    tq = min(512, _round_up(seq, 8))          # big, sublane-dense tiles
    padded_seq = _round_up(seq, tq)

    src = pe_table[:seq]
    if padded_seq != seq:
        src = jnp.pad(src, ((0, padded_seq - seq), (0, 0)))

    out = pl.pallas_call(
        _copy_kernel,
        out_shape=jax.ShapeDtypeStruct((1, padded_seq, emb_dim), pe_table.dtype),
        grid_spec=pltpu.PrefetchScalarGridSpec(
            num_scalar_prefetch=0,
            grid=(padded_seq // tq,),
            in_specs=[pl.BlockSpec((tq, emb_dim), lambda i: (i, 0))],
            out_specs=pl.BlockSpec((1, tq, emb_dim), lambda i: (0, i, 0)),
        ),
        compiler_params=pltpu.CompilerParams(
            dimension_semantics=("parallel",),
        ),
    )(src)
    return out[:, :seq, :]


# ---------------------------------------------------------------------------
# General path: explicit position_ids  ->  VMEM-resident table gather.
# ---------------------------------------------------------------------------
def _gather_kernel(ids_ref, table_ref, out_ref, *, tq, padded_seq):
    # ids_ref: (batch*padded_seq,) int32 in SMEM (scalar prefetch, flattened
    #          to 1-D to avoid 2-D SMEM padding blowup).
    # table_ref: (max_pos, emb_dim) — full table, resident in VMEM.
    # out_ref: (1, tq, emb_dim) output block for (batch b, seq-block i).
    b = pl.program_id(0)
    i = pl.program_id(1)
    base = b * padded_seq + i * tq

    def body(r, carry):
        idx = ids_ref[base + r]
        out_ref[:, pl.ds(r, 1), :] = table_ref[idx, :][None, None, :]
        return carry

    lax.fori_loop(0, tq, body, 0, unroll=(tq <= 16))


def _gathered_positional_encoding(pe_table, position_ids):
    max_pos, emb_dim = pe_table.shape
    batch, seq = position_ids.shape
    tq = min(128, _round_up(seq, 8))
    padded_seq = _round_up(seq, tq)

    ids = position_ids.astype(jnp.int32)
    if padded_seq != seq:
        # Pad with row-0 lookups; the extra rows are sliced off below.
        ids = jnp.pad(ids, ((0, 0), (0, padded_seq - seq)))
    ids_flat = ids.reshape(-1)

    # TODO(synk): for tables too large to keep resident in VMEM (esp. v7x's
    # 64 MiB), fall back to a manually double-buffered per-row DMA gather (P4).

    kernel = functools.partial(_gather_kernel, tq=tq, padded_seq=padded_seq)
    out = pl.pallas_call(
        kernel,
        out_shape=jax.ShapeDtypeStruct((batch, padded_seq, emb_dim), pe_table.dtype),
        grid_spec=pltpu.PrefetchScalarGridSpec(
            num_scalar_prefetch=1,
            grid=(batch, padded_seq // tq),
            in_specs=[
                # Same table block every step -> loaded to VMEM once, reused.
                pl.BlockSpec((max_pos, emb_dim), lambda b, i, ids: (0, 0)),
            ],
            out_specs=pl.BlockSpec((1, tq, emb_dim), lambda b, i, ids: (b, i, 0)),
        ),
        compiler_params=pltpu.CompilerParams(
            dimension_semantics=("parallel", "parallel"),
        ),
    )(ids_flat, pe_table)
    return out[:, :seq, :]


# ---------------------------------------------------------------------------
# Public wrapper, mirroring LearnedPositionalEncoding.forward.
# ---------------------------------------------------------------------------
def learned_positional_encoding(x, pe_table, position_ids=None, *, seq_length=None):
    """Pallas equivalent of LearnedPositionalEncoding.forward (x is ignored)."""
    del x  # unused, exactly like the PyTorch module
    if position_ids is None:
        assert seq_length is not None, "seq_length required when position_ids is None"
        return _contiguous_positional_encoding(pe_table, seq_length)
    return _gathered_positional_encoding(pe_table, position_ids)


if __name__ == "__main__":
    # Small, module-consistent shapes; emb_dim is a multiple of 128 so output
    # stores are lane-dense (unmasked vst).
    max_position_embeddings = 16
    embedding_dim = 128
    seq_length = 8
    batch = 2

    key = jax.random.PRNGKey(0)
    k_table, k_x, k_ids = jax.random.split(key, 3)

    pe_table = jax.random.normal(
        k_table, (max_position_embeddings, embedding_dim), dtype=jnp.float32
    )
    # x is part of the forward signature but unused by the module.
    x = jax.random.normal(k_x, (batch, seq_length, embedding_dim), dtype=jnp.float32)

    # Path 1: default position_ids (arange) -> contiguous tiled copy.
    out_default = learned_positional_encoding(x, pe_table, seq_length=seq_length)
    out_default = jax.block_until_ready(out_default)
    ref_default = pe_table[jnp.arange(seq_length)][None, :, :]
    assert out_default.shape == (1, seq_length, embedding_dim), out_default.shape
    assert jnp.allclose(out_default, ref_default), "default-path mismatch"

    # Path 2: explicit, batched, arbitrary position_ids -> VMEM-resident gather.
    position_ids = jax.random.randint(
        k_ids, (batch, seq_length), 0, max_position_embeddings, dtype=jnp.int32
    )
    out_gather = learned_positional_encoding(x, pe_table, position_ids)
    out_gather = jax.block_until_ready(out_gather)
    ref_gather = pe_table[position_ids]
    assert out_gather.shape == (batch, seq_length, embedding_dim), out_gather.shape
    assert jnp.allclose(out_gather, ref_gather), "gather-path mismatch"

    print("KERNEL_OK")
</pallas_src>

<mosaic_0001>
module attributes {stable_mosaic.version = 11 : i64} {
  func.func @_copy_kernel(%arg0: i32, %arg1: memref<8x128xf32, #tpu.memory_space<vmem>>, %arg2: memref<1x8x128xf32, #tpu.memory_space<vmem>>) attributes {dimension_semantics = [#tpu.dimension_semantics<parallel>], iteration_bounds = array<i64: 1>, scalar_prefetch = 0 : i64, scratch_operands = 0 : i64, tpu.core_type = #tpu.core_type<tc>, window_params = [{transform_indices = @transform_0, window_bounds = array<i64: 8, 128>}, {transform_indices = @transform_1, window_bounds = array<i64: 1, 8, 128>}]} {
    %c0 = arith.constant 0 : index
    %c0_0 = arith.constant 0 : index
    %0 = vector.load %arg1[%c0, %c0_0] : memref<8x128xf32, #tpu.memory_space<vmem>>, vector<8x128xf32>
    %1 = vector.shape_cast %0 : vector<8x128xf32> to vector<1x8x128xf32>
    %c0_1 = arith.constant 0 : index
    %c0_2 = arith.constant 0 : index
    %c0_3 = arith.constant 0 : index
    %2 = vector.load %arg2[%c0_1, %c0_2, %c0_3] : memref<1x8x128xf32, #tpu.memory_space<vmem>>, vector<1x8x128xf32>
    tpu.vector_store %arg2[%c0_1, %c0_2, %c0_3], %1 {strides = array<i32>} : memref<1x8x128xf32, #tpu.memory_space<vmem>>, vector<1x8x128xf32>,
    return
  }
  func.func @transform_0(%arg0: i32) -> (i32, i32) {
    %c0_i32 = arith.constant 0 : i32
    %c0_i32_0 = arith.constant 0 : i32
    return %arg0, %c0_i32 : i32, i32
  }
  func.func @transform_1(%arg0: i32) -> (i32, i32, i32) {
    %c0_i32 = arith.constant 0 : i32
    %c0_i32_0 = arith.constant 0 : i32
    %c0_i32_1 = arith.constant 0 : i32
    return %c0_i32, %arg0, %c0_i32_0 : i32, i32, i32
  }
}

</mosaic_0001>

<bundles_post_ra>
// kernel: tpu_custom_call.1
= control target key start
LH: loop header
LB: loop body
LE: loop exit
PB: predicated region body
PF: predicated region fallthrough
CT: control target
= control target key end

     0   :  { %6 = vsyncpa [#allocation3], 0  ;;  %s124_s0 = inlined_call_operand.hbm [shape: f32[8,128], index: 0, kind: input, shape index: {}]   ;;  %s125_s1 = inlined_call_operand.hbm [shape: f32[1,8,128], index: 1, kind: output, shape index: {}]  }
   0x1   :  { %7 = vsyncpa [#allocation4], 0  ;;  %s88_s6 = smov [#allocation2]   ;;  %s40_s10 = scalar_lea.hbm %s124_s0, 128 }
   0x2   :  { %s14_s7 = sshll.u32 %s88_s6, 4  ;;  %p41_p0 = scmp.ne.s32.totalorder %s124_s0, %s40_s10  ;;  %s15_s7 = int_to_ptr.vmem [resolvable:$true] %s14_s7 }
   0x3   :  { %p44_p1 = scmp.lt.u32.totalorder %s40_s10, %s124_s0 }
   0x5   :  { %p46_p2 = pnand %p44_p1, %p41_p0 }
   0x7   :  { %49 = shalt.err (!%p46_p2)
}
   0x8   :  { %s50_s15 = scalar_lea.vmem %s15_s7, 128  ;;  %p55_p4 = scmp.lt.s32.totalorder %s15_s7, %s15_s7 }
   0x9   :  { %p51_p3 = scmp.ne.s32.totalorder %s15_s7, %s50_s15  ;;  %p56_p5 = scmp.lt.s32.totalorder %s50_s15, %s50_s15 }
   0xb   :  { %p57_p6 = por %p56_p5, %p55_p4 }
   0xd   :  { %p58_p7 = pnand %p57_p6, %p51_p3 }
   0xf   :  { %61 = shalt.err (!%p58_p7)
}
  0x10   :  { %17 = dma.hbm_to_vmem [thread:$0]  %s124_s0, 128, %s15_s7, [#allocation3]  }
  0x11   :  { %84 = dma.done.wait [#allocation3], 128  }
  0x12   :  { %85 = vsyncadd [#allocation3], 4294967168  ;;  %s89_s18 = smov [#allocation5]   ;;  %v21_v0 = vld [vmem:[#allocation2] sm:$0xff] }
  0x13   :  { %s29_s19 = sshll.u32 %s89_s18, 4  ;;  %22 = vst [vmem:[#allocation5] sm:$0xff] %v21_v0  ;;  %s30_s19 = int_to_ptr.vmem [resolvable:$true] %s29_s19 }
  0x14   :  { %s62_s20 = scalar_lea.vmem %s30_s19, 128  ;;  %p67_p9 = scmp.lt.s32.totalorder %s30_s19, %s30_s19 }
  0x15   :  { %p63_p8 = scmp.ne.s32.totalorder %s30_s19, %s62_s20  ;;  %p68_p10 = scmp.lt.s32.totalorder %s62_s20, %s62_s20 }
  0x17   :  { %p69_p11 = por %p68_p10, %p67_p9 }
  0x19   :  { %p70_p12 = pnand %p69_p11, %p63_p8 }
  0x1b   :  { %73 = shalt.err (!%p70_p12)
}
  0x1c   :  { %s74_s23 = scalar_lea.hbm %s125_s1, 128 }
  0x1d   :  { %p75_p13 = scmp.ne.s32.totalorder %s125_s1, %s74_s23  ;;  %p78_p0 = scmp.lt.u32.totalorder %s74_s23, %s125_s1 }
  0x1f   :  { %p80_p1 = pnand %p78_p0, %p75_p13 }
  0x21   :  { %83 = shalt.err (!%p80_p1)
}
  0x22   :  { %32 = dma.vmem_to_hbm [thread:$0]  %s30_s19, 128, %s125_s1, [#allocation4]  }
  0x23   :  { %86 = dma.done.wait [#allocation4], 128  }
  0x24   :  { %87 = vsyncadd [#allocation4], 4294967168 }
  0x25   :  { %36 = vsyncpa [#allocation3], 1 }
  0x26   :  { %37 = vsyncpa [#allocation4], 1 }

</bundles_post_ra>
